<compile_context>
chip_gen: v6e
topology: v6e:2x2x1
jax: 0.10.0
libtpu: 0.0.40
codegen_flags: <defaults>
</compile_context>

<pallas_src>
import functools

import jax
import jax.numpy as jnp
from jax.experimental import pallas as pl
from jax.experimental.pallas import tpu as pltpu


def _ca_kernel(x_ref, w1_ref, b1_ref, w2_ref, b2_ref, o_ref, acc_ref,
               *, inv_hw, thw, hw, need_mask):
    # x_ref:   (1, C, thw)  spatial chunk of one batch element
    # w1_ref:  (Cr, C)      conv1 weight (resident)
    # b1_ref:  (Cr, 1)      conv1 bias as a column
    # w2_ref:  (C, Cr)      conv2 weight (resident)
    # b2_ref:  (C, 1)       conv2 bias as a column
    # o_ref:   (1, C, 1)    per-batch output block (written only in epilogue)
    # acc_ref: (C, thw)     f32 full-width partial-sum accumulator (scratch)
    s = pl.program_id(1)
    last = pl.num_programs(1) - 1

    @pl.when(s == 0)
    def _():
        acc_ref[...] = jnp.zeros_like(acc_ref)

    x = x_ref[0].astype(jnp.float32)                        # (C, thw)

    if need_mask:
        # Mask only the tail chunk; all other chunks are a pure add.
        @pl.when(s < last)
        def _():
            acc_ref[...] += x

        @pl.when(s == last)
        def _():
            col = s * thw + jax.lax.broadcasted_iota(jnp.int32, x.shape, 1)
            acc_ref[...] += jnp.where(col < hw, x, 0.0)
    else:
        acc_ref[...] += x

    # Epilogue: single cross-lane reduce + tiny fused MLP, once per batch elem.
    @pl.when(s == last)
    def _():
        pooled = jnp.sum(acc_ref[...], axis=-1, keepdims=True) * inv_hw  # (C, 1)
        h = jnp.dot(w1_ref[...], pooled,
                    preferred_element_type=jnp.float32) + b1_ref[...]    # (Cr, 1)
        h = jnp.maximum(h, 0.0)
        y = jnp.dot(w2_ref[...], h,
                    preferred_element_type=jnp.float32) + b2_ref[...]    # (C, 1)
        o_ref[...] = y[None].astype(o_ref.dtype)                         # (1, C, 1)


def _pick_thw(hw, cap_lanes):
    """Spatial tile width: full HW if small, else a 128-multiple <= cap,
    preferring one that divides HW (no tail mask)."""
    if hw <= 128:
        return hw
    if hw <= cap_lanes and hw % 128 == 0:
        return hw
    base = min(cap_lanes, (hw // 128) * 128)
    t = base
    while t >= max(128, base // 2):
        if hw % t == 0:
            return t
        t -= 128
    return base


def channel_attention(x_nchw, w1, b1, w2, b2, *,
                      block_bytes_cap=4 * 1024 * 1024):
    """x_nchw: (B, C, H, W) float32.  Returns (B, C, 1, 1) float32."""
    B, C, H, W = x_nchw.shape
    Cr = w1.shape[0]
    HW = H * W
    x_flat = x_nchw.reshape(B, C, HW)
    b1c = b1.reshape(Cr, 1)
    b2c = b2.reshape(C, 1)

    cap_lanes = max(128, (block_bytes_cap // (4 * C)) // 128 * 128)
    thw = _pick_thw(HW, cap_lanes)
    n_s = pl.cdiv(HW, thw)
    need_mask = (HW % thw) != 0

    out = pl.pallas_call(
        functools.partial(_ca_kernel, inv_hw=1.0 / HW, thw=thw, hw=HW,
                          need_mask=need_mask),
        out_shape=jax.ShapeDtypeStruct((B, C, 1), jnp.float32),
        grid_spec=pltpu.PrefetchScalarGridSpec(
            num_scalar_prefetch=0,
            grid=(B, n_s),
            in_specs=[
                pl.BlockSpec((1, C, thw), lambda b, s: (b, 0, s)),
                pl.BlockSpec((Cr, C), lambda b, s: (0, 0)),
                pl.BlockSpec((Cr, 1), lambda b, s: (0, 0)),
                pl.BlockSpec((C, Cr), lambda b, s: (0, 0)),
                pl.BlockSpec((C, 1), lambda b, s: (0, 0)),
            ],
            out_specs=pl.BlockSpec((1, C, 1), lambda b, s: (b, 0, 0)),
            scratch_shapes=[pltpu.VMEM((C, thw), jnp.float32)],
        ),
        compiler_params=pltpu.CompilerParams(
            dimension_semantics=("parallel", "arbitrary"),
            vmem_limit_bytes=32 * 1024 * 1024,
        ),
    )(x_flat, w1, b1c, w2, b2c)

    return out.reshape(B, C, 1, 1)


def _reference(x_nchw, w1, b1, w2, b2):
    gap = jnp.mean(x_nchw, axis=(2, 3))                     # (B, C)
    h = jnp.maximum(gap @ w1.T + b1, 0.0)                   # (B, Cr)
    y = h @ w2.T + b2                                       # (B, C)
    return y[:, :, None, None]


if __name__ == "__main__":
    # Module config: dim must be divisible by reduction=8.
    B, C, H, W = 2, 16, 16, 16
    reduction = 8
    Cr = C // reduction

    key = jax.random.PRNGKey(0)
    kx, kw1, kb1, kw2, kb2 = jax.random.split(key, 5)

    x = jax.random.normal(kx, (B, C, H, W), dtype=jnp.float32)
    # Deterministic synthetic params (Conv2d 1x1 weights squeezed to 2D).
    w1 = jax.random.normal(kw1, (Cr, C), dtype=jnp.float32) * 0.1
    b1 = jax.random.normal(kb1, (Cr,), dtype=jnp.float32) * 0.1
    w2 = jax.random.normal(kw2, (C, Cr), dtype=jnp.float32) * 0.1
    b2 = jax.random.normal(kb2, (C,), dtype=jnp.float32) * 0.1

    out = channel_attention(x, w1, b1, w2, b2)
    jax.block_until_ready(out)

    ref = _reference(x, w1, b1, w2, b2)
    assert out.shape == (B, C, 1, 1)
    assert jnp.allclose(out, ref, atol=1e-5, rtol=1e-5), "mismatch vs reference"

    print("KERNEL_OK")
</pallas_src>

<mosaic_0001>
module attributes {stable_mosaic.version = 11 : i64} {
  func.func @_ca_kernel(%arg0: i32, %arg1: i32, %arg2: memref<1x16x256xf32, #tpu.memory_space<vmem>>, %arg3: memref<2x16xf32, #tpu.memory_space<vmem>>, %arg4: memref<2x1xf32, #tpu.memory_space<vmem>>, %arg5: memref<16x2xf32, #tpu.memory_space<vmem>>, %arg6: memref<16x1xf32, #tpu.memory_space<vmem>>, %arg7: memref<1x16x1xf32, #tpu.memory_space<vmem>>, %arg8: memref<16x256xf32, #tpu.memory_space<vmem>>) attributes {dimension_semantics = [#tpu.dimension_semantics<parallel>, #tpu.dimension_semantics<arbitrary>], iteration_bounds = array<i64: 2, 1>, scalar_prefetch = 0 : i64, scratch_operands = 1 : i64, tpu.core_type = #tpu.core_type<tc>, window_params = [{transform_indices = @transform_0, window_bounds = array<i64: 1, 16, 256>}, {pipeline_mode = #tpu.pipeline_mode<synchronous>, transform_indices = @transform_1, window_bounds = array<i64: 2, 16>}, {pipeline_mode = #tpu.pipeline_mode<synchronous>, transform_indices = @transform_2, window_bounds = array<i64: 2, 1>}, {pipeline_mode = #tpu.pipeline_mode<synchronous>, transform_indices = @transform_3, window_bounds = array<i64: 16, 2>}, {pipeline_mode = #tpu.pipeline_mode<synchronous>, transform_indices = @transform_4, window_bounds = array<i64: 16, 1>}, {transform_indices = @transform_5, window_bounds = array<i64: 1, 16, 1>}]} {
    %c0_i32 = arith.constant 0 : i32
    %0 = arith.cmpi eq, %arg1, %c0_i32 : i32
    %1 = arith.extui %0 : i1 to i32
    %c0_i32_0 = arith.constant 0 : i32
    %2 = arith.cmpi ne, %1, %c0_i32_0 : i32
    scf.if %2 {
      %cst = arith.constant 0.000000e+00 : f32
      %11 = vector.broadcast %cst : f32 to vector<16x256xf32>
      %c0_9 = arith.constant 0 : index
      %c0_10 = arith.constant 0 : index
      %12 = vector.load %arg8[%c0_9, %c0_10] : memref<16x256xf32, #tpu.memory_space<vmem>>, vector<16x256xf32>
      tpu.vector_store %arg8[%c0_9, %c0_10], %11 {strides = array<i32>} : memref<16x256xf32, #tpu.memory_space<vmem>>, vector<16x256xf32>,
    } else {
    }
    %c0 = arith.constant 0 : index
    %c0_1 = arith.constant 0 : index
    %c0_2 = arith.constant 0 : index
    %3 = vector.load %arg2[%c0, %c0_1, %c0_2] : memref<1x16x256xf32, #tpu.memory_space<vmem>>, vector<1x16x256xf32>
    %4 = vector.shape_cast %3 : vector<1x16x256xf32> to vector<16x256xf32>
    %c0_3 = arith.constant 0 : index
    %c0_4 = arith.constant 0 : index
    %5 = vector.load %arg8[%c0_3, %c0_4] : memref<16x256xf32, #tpu.memory_space<vmem>>, vector<16x256xf32>
    %6 = arith.addf %5, %4 : vector<16x256xf32>
    %c0_5 = arith.constant 0 : index
    %c0_6 = arith.constant 0 : index
    %7 = vector.load %arg8[%c0_5, %c0_6] : memref<16x256xf32, #tpu.memory_space<vmem>>, vector<16x256xf32>
    tpu.vector_store %arg8[%c0_5, %c0_6], %6 {strides = array<i32>} : memref<16x256xf32, #tpu.memory_space<vmem>>, vector<16x256xf32>,
    %c0_i32_7 = arith.constant 0 : i32
    %8 = arith.cmpi eq, %arg1, %c0_i32_7 : i32
    %9 = arith.extui %8 : i1 to i32
    %c0_i32_8 = arith.constant 0 : i32
    %10 = arith.cmpi ne, %9, %c0_i32_8 : i32
    scf.if %10 {
      %c0_9 = arith.constant 0 : index
      %c0_10 = arith.constant 0 : index
      %11 = vector.load %arg8[%c0_9, %c0_10] : memref<16x256xf32, #tpu.memory_space<vmem>>, vector<16x256xf32>
      %cst = arith.constant dense<0.000000e+00> : vector<16xf32>
      %12 = vector.multi_reduction <add>, %11, %cst [1] : vector<16x256xf32> to vector<16xf32>
      %13 = vector.shape_cast %12 : vector<16xf32> to vector<16x1xf32>
      %cst_11 = arith.constant 3.906250e-03 : f32
      %14 = vector.broadcast %cst_11 : f32 to vector<16x1xf32>
      %15 = arith.mulf %13, %14 : vector<16x1xf32>
      %c0_12 = arith.constant 0 : index
      %c0_13 = arith.constant 0 : index
      %16 = vector.load %arg3[%c0_12, %c0_13] : memref<2x16xf32, #tpu.memory_space<vmem>>, vector<2x16xf32>
      %cst_14 = arith.constant dense<0.000000e+00> : vector<2x1xf32>
      %17 = tpu.matmul %16, %15, %cst_14 {dimension_numbers = #tpu.dot_dimension_numbers<[1], [0], [0], [1], [0, 0, 1, 1], [], []>} : vector<2x16xf32>, vector<16x1xf32>, vector<2x1xf32> -> vector<2x1xf32>
      %c0_15 = arith.constant 0 : index
      %c0_16 = arith.constant 0 : index
      %18 = vector.load %arg4[%c0_15, %c0_16] : memref<2x1xf32, #tpu.memory_space<vmem>>, vector<2x1xf32>
      %19 = arith.addf %17, %18 : vector<2x1xf32>
      %cst_17 = arith.constant 0.000000e+00 : f32
      %20 = vector.broadcast %cst_17 : f32 to vector<2x1xf32>
      %21 = arith.maximumf %19, %20 : vector<2x1xf32>
      %c0_18 = arith.constant 0 : index
      %c0_19 = arith.constant 0 : index
      %22 = vector.load %arg5[%c0_18, %c0_19] : memref<16x2xf32, #tpu.memory_space<vmem>>, vector<16x2xf32>
      %cst_20 = arith.constant dense<0.000000e+00> : vector<16x1xf32>
      %23 = tpu.matmul %22, %21, %cst_20 {dimension_numbers = #tpu.dot_dimension_numbers<[1], [0], [0], [1], [0, 0, 1, 1], [], []>} : vector<16x2xf32>, vector<2x1xf32>, vector<16x1xf32> -> vector<16x1xf32>
      %c0_21 = arith.constant 0 : index
      %c0_22 = arith.constant 0 : index
      %24 = vector.load %arg6[%c0_21, %c0_22] : memref<16x1xf32, #tpu.memory_space<vmem>>, vector<16x1xf32>
      %25 = arith.addf %23, %24 : vector<16x1xf32>
      %26 = vector.shape_cast %25 : vector<16x1xf32> to vector<1x16x1xf32>
      %c0_23 = arith.constant 0 : index
      %c0_24 = arith.constant 0 : index
      %c0_25 = arith.constant 0 : index
      %27 = vector.load %arg7[%c0_23, %c0_24, %c0_25] : memref<1x16x1xf32, #tpu.memory_space<vmem>>, vector<1x16x1xf32>
      tpu.vector_store %arg7[%c0_23, %c0_24, %c0_25], %26 {strides = array<i32>} : memref<1x16x1xf32, #tpu.memory_space<vmem>>, vector<1x16x1xf32>,
    } else {
    }
    return
  }
  func.func @transform_0(%arg0: i32, %arg1: i32) -> (i32, i32, i32) {
    %c0_i32 = arith.constant 0 : i32
    %c0_i32_0 = arith.constant 0 : i32
    return %arg0, %c0_i32, %arg1 : i32, i32, i32
  }
  func.func @transform_1(%arg0: i32, %arg1: i32) -> (i32, i32) {
    %c0_i32 = arith.constant 0 : i32
    %c0_i32_0 = arith.constant 0 : i32
    %c0_i32_1 = arith.constant 0 : i32
    return %c0_i32, %c0_i32_0 : i32, i32
  }
  func.func @transform_2(%arg0: i32, %arg1: i32) -> (i32, i32) {
    %c0_i32 = arith.constant 0 : i32
    %c0_i32_0 = arith.constant 0 : i32
    %c0_i32_1 = arith.constant 0 : i32
    return %c0_i32, %c0_i32_0 : i32, i32
  }
  func.func @transform_3(%arg0: i32, %arg1: i32) -> (i32, i32) {
    %c0_i32 = arith.constant 0 : i32
    %c0_i32_0 = arith.constant 0 : i32
    %c0_i32_1 = arith.constant 0 : i32
    return %c0_i32, %c0_i32_0 : i32, i32
  }
  func.func @transform_4(%arg0: i32, %arg1: i32) -> (i32, i32) {
    %c0_i32 = arith.constant 0 : i32
    %c0_i32_0 = arith.constant 0 : i32
    %c0_i32_1 = arith.constant 0 : i32
    return %c0_i32, %c0_i32_0 : i32, i32
  }
  func.func @transform_5(%arg0: i32, %arg1: i32) -> (i32, i32, i32) {
    %c0_i32 = arith.constant 0 : i32
    %c0_i32_0 = arith.constant 0 : i32
    %c0_i32_1 = arith.constant 0 : i32
    return %arg0, %c0_i32, %c0_i32_0 : i32, i32, i32
  }
}

</mosaic_0001>

<bundles_post_ra>
// kernel: tpu_custom_call.1
= control target key start
LH: loop header
LB: loop body
LE: loop exit
PB: predicated region body
PF: predicated region fallthrough
CT: control target
= control target key end

     0   :  { %10 = vsyncpa [#allocation4], 0  ;;  %s874_s0 = inlined_call_operand.hbm [shape: f32[2,16,256], index: 0, kind: input, shape index: {}]   ;;  %s875_s1 = inlined_call_operand.vmem [shape: f32[2,16], index: 1, kind: input, shape index: {}]   ;;  %s876_s2 = inlined_call_operand.vmem [shape: f32[2,1], index: 2, kind: input, shape index: {}]   ;;  %s877_s3 = inlined_call_operand.vmem [shape: f32[16,2], index: 3, kind: input, shape index: {}]   ;;  %s878_s4 = inlined_call_operand.vmem [shape: f32[16,1], index: 4, kind: input, shape index: {}]   ;;  %s879_s5 = inlined_call_operand.vmem [shape: f32[2,16,1], index: 5, kind: output, shape index: {}]  }
   0x1   :  { %12 = vsyncpa [#allocation4 + $0x1], 0  ;;  %s760_s18 = smov 0   ;;  %s762_s19 = smov 0  }
   0x2   :  { %s764_s20 = smov 0   ;;  %s766_s21 = smov 0  }
   0x3   :  { %s768_s22 = smov 0   ;;  %s770_s23 = smov 0  }
   0x4 LB: > { %s549_s24 = sadd.s32 4294967295, %s723_s23   ;;  %s30_s25 = sadd.s32 1, %s719_s22  ;;  %s723_s23 = sphi %s770_s23, %s18_s23   ;;  %s719_s22 = sphi %s768_s22, %s887_s22   ;;  %s715_s21 = sphi %s766_s21, %s886_s21   ;;  %s711_s20 = sphi %s764_s20, %s885_s20   ;;  %s707_s19 = sphi %s762_s19, %s884_s19   ;;  %s703_s18 = sphi %s760_s18, %s883_s18  }
   0x5   : > { %p32_p0 = scmp.ge.s32.totalorder %s30_s25, 2  ;;  %s39_s26 = sadd.s32 1, %s711_s20 }
   0x6   : > { %p46_p1 = scmp.ne.s32.totalorder %s711_s20, %s707_s19  ;;  %p47_p2 = scmp.eq.s32.totalorder %s723_s23, 0 }
   0x7   : > { %s889_s25 = smov (%p32_p0, %s30_s25), 0  ;;  %p52_p4 = scmp.ne.s32.totalorder %s707_s19, %s703_s18 }
   0x8   : > { %p796_p3 = por %p47_p2, %p46_p1  ;;  %s34_s28 = ssub.s32 %s719_s22, %s889_s25 }
   0x9   : > { %p53_p5 = scmp.eq.s32.totalorder %s549_s24, 0  ;;  %p37_p6 = scmp.eq.s32.totalorder %s34_s28, 0 }
   0xa   : > { %p592_p8 = scmp.lt.s32.totalorder %s723_s23, 2  ;;  %s198_s6 = sand.u32 1, %s711_s20  }
   0xb   : > { %p803_p7 = por %p53_p5, %p52_p4  ;;  %s566_s7 = sshll.u32 %s719_s22, 9 }
   0xc   : > { %s809_s30 = scalar_select %p37_p6, %s711_s20, %s39_s26  }
   0xd   : > { %s553_s8 = sshll.u32 %s198_s6, 5  ;;  %s210_s11 = scalar_lea.hbm %s874_s0, %s566_s7 }
   0xe   : > { %s202_s12 = scalar_lea.vmem [#allocation3], %s553_s8  ;;  %p818_p9 = pnand %p592_p8, %p796_p3 }
   0xf   : > { %s211_s13 = sshll.u32 %s202_s12, 4  ;;  %s199_s15 = scalar_lea.sflag [#allocation4], %s198_s6  ;;  %s212_s13 = int_to_ptr.vmem [resolvable:$true] %s211_s13 }
  0x10   : > { %p647_p10 = pneg %p818_p9  ;;  %s658_s16 = scalar_lea.vmem %s212_s13, 512 }
  0x11   : > { %p659_p11 = scmp.ne.s32.totalorder %s212_s13, %s658_s16  ;;  %s725_s17 = smov [#allocation3]  }
  0x12   : > { %s663_s18 = sshll.u32 %s725_s17, 4  ;;  %s664_s18 = int_to_ptr.vmem [resolvable:$false] %s663_s18 }
  0x13   : > { %p661_p12 = pnand %p659_p11, %p647_p10  ;;  %s665_s24 = scalar_lea.vmem %s664_s18, 1024 }
  0x14   : > { %p666_p0 = scmp.lt.s32.totalorder %s212_s13, %s664_s18  ;;  %p667_p1 = scmp.lt.s32.totalorder %s665_s24, %s658_s16 }
  0x15   : > { %p662_p13 = pneg %p661_p12 }
  0x16   : > { %p668_p2 = por %p667_p1, %p666_p0 }
  0x18   : > { %p669_p3 = pnand %p668_p2, %p662_p13 }
  0x1a   : > { %672 = shalt.err (!%p669_p3)
}
  0x1b   : > { %s726_s26 = smov 256   ;;  %s727_s27 = smov 16  }
  0x1c   : > { %591 = dma.hbm_to_vmem [thread:$0]  (!%p818_p9), %s210_s11, 512, %s212_s13, %s199_s15, %s726_s26, %s726_s26, %s727_s27  }
  0x1d   : > { %p556_p4 = scmp.ge.s32.totalorder %s723_s23, 1  ;;  %p219_p5 = scmp.lt.s32.totalorder %s723_s23, 3 }
  0x1f   : > { %p220_p6 = pnand %p556_p4, %p219_p5 }
  0x20   : > { %s225_s28 = sand.u32 (!%p220_p6), 1, %s707_s19  }
  0x21   : > { %223 = sbr.rel (%p220_p6) target bundleno = 584 (0x248), region = 40  ;;  %s557_s6 = sshll.u32 (!%p220_p6), %s225_s28, 5 }
  0x22   : > { %s226_s7 = scalar_lea.sflag (!%p220_p6), [#allocation4], %s225_s28  ;;  %s229_s8 = scalar_lea.vmem (!%p220_p6), [#allocation3], %s557_s6 }
  0x26   : > { %698 = dma.done.wait (%p803_p7), %s226_s7, 512  }
  0x27   : > { %700 = vsyncadd (%p803_p7), %s226_s7, 4294966784  ;;  %v272_v0 = vld [vmem:[%s229_s8 + $0x10] sm:$0xff]  ;;  %v273_v1 = vld [vmem:[%s229_s8 + $0x18] sm:$0xff]  ;;  %v728_v6 = vmov 0.0   ;;  %vm729_vm0 = vmmov 0   ;;  %vm303_vm1 = vcmask 130048  }
  0x28   : > { %v270_v2 = vld [vmem:[%s229_s8] sm:$0xff]  ;;  %v296_v3 = vadd.f32 %v273_v1, %v272_v0  ;;  %v271_v4 = vld [vmem:[%s229_s8 + $0x8] sm:$0xff]  ;;  %574 = vmatprep.subr.mxu0 %v728_v6  ;;  %578 = vmatprep.mubr.msk.f32.mxu0 %vm729_vm0, %v728_v6  ;;  %vm382_vm2 = vcmask 15360   ;;  %vm389_vm3 = vcmask 1041408   ;;  %p257_p7 = scmp.lt.s32.totalorder %s715_s21, 1  ;;  %vm468_vm4 = vcmask 7168  }
  0x29   : > { %v293_v5 = vadd.f32 %v271_v4, %v270_v2  ;;  %v301_v11 = vld [vmem:[%s875_s1] sm:$0x3]  ;;  %v379_v18 = vld [vmem:[%s877_s3 + $0x8] sm:$0xff] }
  0x2a   : > { %297 = vadd.xlane.f32.xlu0 %v296_v3  ;;  %v378_v12 = vld [vmem:[%s877_s3] sm:$0xff]  ;;  %s891_s21 = smov (!%p257_p7, %s715_s21), 1  ;;  %v381_v19 = vld [vmem:[%s878_s4 + $0x8] sm:$0xff] }
  0x2b   : > { %583 = vmatprep.mubr.msk.f32.mxu1 %vm382_vm2, %v378_v12  ;;  %v302_v13 = vld [vmem:[%s876_s2] sm:$0x3]  ;;  %s567_s16 = sshll.u32 %s891_s21, 4 }
  0x2c   : > { %s261_s27 = scalar_lea.vmem %s879_s5, %s567_s16  ;;  %v380_v21 = vld [vmem:[%s878_s4] sm:$0xff] }
  0x2e   : > { %294 = vadd.xlane.f32.xlu0 %v293_v5 }
  0xb3   : > { %v298_v7 = vpop.xlane.xlu0 %297 }
  0xb4   : > { %v300_v8 = vmul.f32 0.00390625, %v298_v7 }
  0xb6   : > { %575 = vmatpush3.msra.mxu0 %v300_v8 }
  0xb7   : > { %v295_v9 = vpop.xlane.xlu0 %294  ;;  %576 = vmatprep.subr.mxu0 %v728_v6 }
  0xb8   : > { %v299_v10 = vmul.f32 0.00390625, %v295_v9 }
  0xba   : > { %577 = vmatpush3.msra.mxu0 %v299_v10 }
  0xbb   : > { %579 = vmatmul.mubr.msk.f32.vlgmr.msra.gmra.mxu0 %vm303_vm1, %v301_v11 }
 0x17b   : > { %v373_v14 = vpop.f32.mrf.mxu0 }
 0x17c   : > { %v374_v15 = vadd.f32 %v373_v14, %v302_v13 }
 0x17d   : > { %v580_v16 = vpop.f32.mrf.mxu0 }
 0x17e   : > { %v377_v17 = vmax.f32 %v374_v15, 0.0 }
 0x180   : > { %581 = vmatprep.subr.msk.mxu1 %vm389_vm3, %v377_v17 }
 0x181   : > { %582 = vmatpush3.msk.msra.mxu1 %vm389_vm3, %v377_v17 }
 0x182   : > { %584 = vmatmul.mubr.msk.f32.vlgmr.msra.gmra.mxu1 %vm382_vm2, %v379_v18 }
 0x242   : > { %v585_v20 = vpop.f32.mrf.mxu1 }
 0x243   : > { %v465_v22 = vadd.f32 %v585_v20, %v381_v19 }
 0x244   : > { %v459_v23 = vpop.f32.mrf.mxu1 }
 0x245   : > { %470 = vst.msk [vmem:[%s261_s27 + $0x8] sm:$0xff] %vm468_vm4, %v465_v22  ;;  %v460_v24 = vadd.f32 %v459_v23, %v380_v21 }
 0x247   : > { %469 = vst.msk [vmem:[%s261_s27] sm:$0xff] %vm468_vm4, %v460_v24 }
 0x248 PF: > { %s18_s23 = sadd.s32 1, %s723_s23   ;;  %s883_s18 = smov %s707_s19 }
 0x249   : > { %p15_p8 = scmp.ge.s32.totalorder %s18_s23, 4   ;;  %s884_s19 = smov %s711_s20 }
 0x24a   : > { %s885_s20 = smov %s809_s30  ;;  %s886_s21 = smov %s719_s22 }
 0x24b   : > { %s887_s22 = smov %s889_s25  ;;  %17 = sbr.rel (!%p15_p8) target bundleno = 4 (0x4), region = 88 }
 0x250   :  { %492 = vsyncpa [#allocation4], 1 }
 0x251   :  { %494 = vsyncpa [#allocation4 + $0x1], 1 }

</bundles_post_ra>
